<compile_context>
chip_gen: v7x
topology: tpu7x:2x2x1
jax: 0.10.0
libtpu: 0.0.40
codegen_flags: <defaults>
</compile_context>

<pallas_src>
import jax
import jax.numpy as jnp
from jax import lax
from jax.experimental import pallas as pl
from jax.experimental.pallas import tpu as pltpu


def _round_up(a, b):
    return (a + b - 1) // b * b


def _vmem_limit_bytes():
    """Per-generation VMEM budget (v7x: 64 MiB/TC, v5e/v6e: 128 MiB)."""
    try:
        cap = pltpu.get_tpu_info().vmem_capacity_bytes
    except Exception:
        cap = 64 * 1024 * 1024  # conservative (v7x physical size)
    return int(min(max(cap - 16 * 1024 * 1024, 32 * 1024 * 1024),
                   100 * 1024 * 1024))


def ref_conv_transpose2d(x, weight, bias, stride):
    """Reference: transposed conv expressed as an input-dilated convolution."""
    C_in, C_out, kh, kw = weight.shape
    w_flip = weight[:, :, ::-1, ::-1]
    w_oihw = jnp.transpose(w_flip, (1, 0, 2, 3))              # (C_out, C_in, kh, kw)
    y = lax.conv_general_dilated(
        x, w_oihw,
        window_strides=(1, 1),
        padding=[(kh - 1, kh - 1), (kw - 1, kw - 1)],
        lhs_dilation=(stride, stride),
        dimension_numbers=('NCHW', 'OIHW', 'NCHW'),
        precision=lax.Precision.HIGHEST)
    return y + bias[None, :, None, None]


# ----------------------------------------------------------------------------
# Fused kernel (stride == patch_size): GEMM + reassembly + final-layout store.
# ----------------------------------------------------------------------------
def _fused_backproj_kernel(x_ref, a_ref, b_ref, o_ref):
    """One (n, h) grid step: writes out[n, :, h*P:(h+1)*P, :] in final layout.

    x_ref: (1, 1, C_in, W)          activations of token row h of image n
    a_ref: (C_out*P*P, C_in) bf16   flattened ConvTranspose2d weight (resident)
    b_ref: (C_out*P*P, 1)    f32    per-(c, kh, kw) bias            (resident)
    o_ref: (1, C_out, 1, P, W, P)   final-layout output block
    """
    _, c_out, _, p, w, _ = o_ref.shape
    xb = x_ref[0, 0].astype(jnp.bfloat16)                                # (C_in, W)
    acc = jnp.dot(a_ref[...], xb, preferred_element_type=jnp.float32)    # (Nc, W)
    acc = acc + b_ref[...]
    t = acc.reshape(c_out, p, p, w)      # [c, kh, kw, w]  (leading split: free)
    t = jnp.swapaxes(t, -1, -2)          # [c, kh, w, kw]  (XLU minor transpose)
    o_ref[...] = t.reshape(o_ref.shape).astype(o_ref.dtype)


def _fused_nonoverlap(x, w_bf16, bias):
    N, C_in, H, W = x.shape
    _, C_out, P, _ = w_bf16.shape
    Nc = C_out * P * P

    # (N, H, C_in, W): a clean (C_in, W) tile per grid step (input-sized
    # transpose; the P^2-larger output is written exactly once, in place).
    x_r = jnp.transpose(x, (0, 2, 1, 3))
    # A[(c, kh, kw), k] = weight[k, c, kh, kw]; rows match the bias layout.
    a = jnp.transpose(w_bf16, (1, 2, 3, 0)).reshape(Nc, C_in)
    b_col = jnp.repeat(bias.astype(jnp.float32), P * P).reshape(Nc, 1)

    out6 = pl.pallas_call(
        _fused_backproj_kernel,
        out_shape=jax.ShapeDtypeStruct((N, C_out, H, P, W, P), x.dtype),
        grid=(N, H),
        in_specs=[
            pl.BlockSpec((1, 1, C_in, W), lambda n, h: (n, h, 0, 0)),
            pl.BlockSpec((Nc, C_in), lambda n, h: (0, 0)),   # resident weight
            pl.BlockSpec((Nc, 1), lambda n, h: (0, 0)),      # resident bias
        ],
        out_specs=pl.BlockSpec((1, C_out, 1, P, W, P),
                               lambda n, h: (n, 0, h, 0, 0, 0)),
        compiler_params=pltpu.CompilerParams(
            dimension_semantics=("parallel", "parallel"),
            vmem_limit_bytes=_vmem_limit_bytes()),
    )(x_r, a, b_col)
    # (N, C_out, H, P, W, P) -> (N, C_out, H*P, W*P): adjacent-dim merge = free view.
    return out6.reshape(N, C_out, H * P, W * P)


# ----------------------------------------------------------------------------
# Unfused fallback: one big (M, K) @ (K, Nc) GEMM kernel + XLA reassembly.
# ----------------------------------------------------------------------------
def _gemm_bias_kernel(x_ref, w_ref, b_ref, o_ref):
    acc = jnp.dot(x_ref[...].astype(jnp.bfloat16), w_ref[...],
                  preferred_element_type=jnp.float32)
    o_ref[...] = (acc + b_ref[...]).astype(o_ref.dtype)


def _gemm_bias(x, w_bf16, b):
    """x:(M,K) @ w:(K,Nc) + b:(Nc,) via a tiled Pallas MXU kernel -> (M,Nc) f32."""
    M, K = x.shape
    Nc = w_bf16.shape[1]

    # Lane-dense output columns (unmasked vst): pad Nc to a multiple of 128.
    Nc_pad = _round_up(Nc, 128)
    if Nc_pad != Nc:
        w_bf16 = jnp.pad(w_bf16, ((0, 0), (0, Nc_pad - Nc)))
        b = jnp.pad(b, (0, Nc_pad - Nc))
    b2 = b.astype(jnp.float32).reshape(1, Nc_pad)

    limit = _vmem_limit_bytes()
    TM = min(512, _round_up(M, 8))
    per_row = 2 * (K * x.dtype.itemsize + Nc_pad * 4)   # double-buffered x/out rows
    while TM > 8 and TM * per_row > limit // 2:
        TM = _round_up((TM + 1) // 2, 8)
    if TM > 8 and M <= TM:
        TM = _round_up((TM + 1) // 2, 8)                # >= 2 row tiles (v7x megacore)
    M_pad = _round_up(M, TM)
    if M_pad != M:
        x = jnp.pad(x, ((0, M_pad - M), (0, 0)))

    out_shape = jax.ShapeDtypeStruct((M_pad, Nc_pad), jnp.float32)
    if K * Nc_pad * 2 <= 4 * 1024 * 1024:
        # Small weight: keep weight + bias resident in VMEM, 1-D grid over rows.
        out = pl.pallas_call(
            _gemm_bias_kernel,
            out_shape=out_shape,
            grid=(M_pad // TM,),
            in_specs=[pl.BlockSpec((TM, K), lambda i: (i, 0)),
                      pl.BlockSpec((K, Nc_pad), lambda i: (0, 0)),
                      pl.BlockSpec((1, Nc_pad), lambda i: (0, 0))],
            out_specs=pl.BlockSpec((TM, Nc_pad), lambda i: (i, 0)),
            compiler_params=pltpu.CompilerParams(
                dimension_semantics=("parallel",), vmem_limit_bytes=limit),
        )(x, w_bf16, b2)
    else:
        TN = 512 if Nc_pad % 512 == 0 else (256 if Nc_pad % 256 == 0 else 128)
        out = pl.pallas_call(
            _gemm_bias_kernel,
            out_shape=out_shape,
            grid=(M_pad // TM, Nc_pad // TN),
            in_specs=[pl.BlockSpec((TM, K), lambda i, j: (i, 0)),
                      pl.BlockSpec((K, TN), lambda i, j: (0, j)),
                      pl.BlockSpec((1, TN), lambda i, j: (0, j))],
            out_specs=pl.BlockSpec((TM, TN), lambda i, j: (i, j)),
            compiler_params=pltpu.CompilerParams(
                dimension_semantics=("parallel", "parallel"),
                vmem_limit_bytes=limit),
        )(x, w_bf16, b2)
    return out[:M, :Nc]


def _unfused_nonoverlap(x, w_bf16, bias):
    N, C_in, H, W = x.shape
    _, C_out, P, _ = w_bf16.shape
    x_flat = jnp.transpose(x, (0, 2, 3, 1)).reshape(N * H * W, C_in)
    w_flat = w_bf16.reshape(C_in, C_out * P * P)
    b_flat = jnp.repeat(bias.astype(jnp.float32), P * P)
    contrib = _gemm_bias(x_flat, w_flat, b_flat)          # (N*H*W, C_out*P*P) f32
    contrib = contrib.reshape(N, H, W, C_out, P, P)
    out = jnp.transpose(contrib, (0, 3, 1, 4, 2, 5)).reshape(N, C_out, H * P, W * P)
    return out.astype(x.dtype)


# ----------------------------------------------------------------------------
# Public entry point.
# ----------------------------------------------------------------------------
def pallas_patch_backprojection(x, weight, bias, stride):
    """ConvTranspose2d forward: x:(N,C_in,H,W), weight:(C_in,C_out,P,P), bias:(C_out,)."""
    N, C_in, H, W = x.shape
    _, C_out, P, _ = weight.shape

    if stride == P:
        w_bf16 = weight.astype(jnp.bfloat16)
        if P % 8 == 0:
            try:
                out = _fused_nonoverlap(x, w_bf16, bias)
                jax.block_until_ready(out)   # surface any lowering/runtime issue here
                return out
            except Exception:
                # Fall back to the (verified) unfused GEMM + XLA reassembly path
                # if the fused kernel's in-VMEM minor transpose is unsupported.
                pass
        return _unfused_nonoverlap(x, w_bf16, bias)

    # TODO(synk): overlapping / gapped strides (stride != patch_size) have no clean
    # single-GEMM Pallas mapping here; defer to XLA's input-dilated convolution.
    return ref_conv_transpose2d(x, weight.astype(x.dtype), bias, stride)


class PatchBackProjection:
    """JAX/Pallas port of the PyTorch Patch_BackProjection module (forward)."""

    def __init__(self, embed_dim, orig_in_chans, patch_size, stride, key,
                 dtype=jnp.float32):
        kw_key, kb_key = jax.random.split(key)
        fan_in = embed_dim * patch_size * patch_size
        bound = 1.0 / (fan_in ** 0.5)
        # torch ConvTranspose2d weight layout: (in_channels, out_channels, kH, kW)
        self.weight = jax.random.uniform(
            kw_key, (embed_dim, orig_in_chans, patch_size, patch_size),
            minval=-bound, maxval=bound, dtype=dtype)
        self.bias = jax.random.uniform(
            kb_key, (orig_in_chans,), minval=-bound, maxval=bound, dtype=dtype)
        # bf16 copy fed to the MXU (f32 master kept for reference checks).
        self.weight_bf16 = self.weight.astype(jnp.bfloat16)
        self.patch_size = patch_size
        self.stride = stride

    def __call__(self, x):
        return pallas_patch_backprojection(x, self.weight_bf16, self.bias,
                                            self.stride)


if __name__ == "__main__":
    key = jax.random.PRNGKey(0)
    k_x, k_p = jax.random.split(key)

    # Small, module-consistent shapes: tokens on a 4x4 grid, embed_dim=32,
    # back-projected to 4 channels with 8x8 patches (stride == patch_size).
    N, embed_dim, H, W = 2, 32, 4, 4
    orig_in_chans, patch_size, stride = 4, 8, 8

    x = jax.random.normal(k_x, (N, embed_dim, H, W), dtype=jnp.float32)
    module = PatchBackProjection(embed_dim, orig_in_chans, patch_size, stride,
                                 key=k_p)

    out = jax.block_until_ready(module(x))

    H_out = (H - 1) * stride + patch_size
    W_out = (W - 1) * stride + patch_size
    assert out.shape == (N, orig_in_chans, H_out, W_out), out.shape

    # Reference with operands rounded to bf16 (exactly what the MXU consumes)
    # and f32 accumulation -> differences are only summation-order noise.
    x_r = x.astype(jnp.bfloat16).astype(jnp.float32)
    w_r = module.weight.astype(jnp.bfloat16).astype(jnp.float32)
    ref = ref_conv_transpose2d(x_r, w_r, module.bias, stride)
    assert jnp.allclose(out, ref, atol=2e-3, rtol=2e-3), \
        float(jnp.max(jnp.abs(out - ref)))

    print("KERNEL_OK")
</pallas_src>

<mosaic_0001>
module attributes {stable_mosaic.version = 11 : i64} {
  func.func @_fused_backproj_kernel(%arg0: i32, %arg1: i32, %arg2: memref<1x1x32x4xf32, #tpu.memory_space<vmem>>, %arg3: memref<256x32xbf16, #tpu.memory_space<vmem>>, %arg4: memref<256x1xf32, #tpu.memory_space<vmem>>, %arg5: memref<1x4x1x8x4x8xf32, #tpu.memory_space<vmem>>) attributes {dimension_semantics = [#tpu.dimension_semantics<parallel>, #tpu.dimension_semantics<parallel>], iteration_bounds = array<i64: 2, 4>, scalar_prefetch = 0 : i64, scratch_operands = 0 : i64, tpu.core_type = #tpu.core_type<tc>, window_params = [{transform_indices = @transform_0, window_bounds = array<i64: 1, 1, 32, 4>}, {pipeline_mode = #tpu.pipeline_mode<synchronous>, transform_indices = @transform_1, window_bounds = array<i64: 256, 32>}, {pipeline_mode = #tpu.pipeline_mode<synchronous>, transform_indices = @transform_2, window_bounds = array<i64: 256, 1>}, {transform_indices = @transform_3, window_bounds = array<i64: 1, 4, 1, 8, 4, 8>}]} {
    %c0 = arith.constant 0 : index
    %c0_0 = arith.constant 0 : index
    %c0_1 = arith.constant 0 : index
    %c0_2 = arith.constant 0 : index
    %0 = vector.load %arg2[%c0, %c0_0, %c0_1, %c0_2] : memref<1x1x32x4xf32, #tpu.memory_space<vmem>>, vector<1x1x32x4xf32>
    %1 = vector.shape_cast %0 : vector<1x1x32x4xf32> to vector<32x4xf32>
    %2 = arith.truncf %1 : vector<32x4xf32> to vector<32x4xbf16>
    %c0_3 = arith.constant 0 : index
    %c0_4 = arith.constant 0 : index
    %3 = vector.load %arg3[%c0_3, %c0_4] : memref<256x32xbf16, #tpu.memory_space<vmem>>, vector<256x32xbf16>
    %cst = arith.constant dense<0.000000e+00> : vector<256x4xf32>
    %4 = tpu.matmul %3, %2, %cst {dimension_numbers = #tpu.dot_dimension_numbers<[1], [0], [0], [1], [0, 0, 1, 1], [], []>} : vector<256x32xbf16>, vector<32x4xbf16>, vector<256x4xf32> -> vector<256x4xf32>
    %c0_5 = arith.constant 0 : index
    %c0_6 = arith.constant 0 : index
    %5 = vector.load %arg4[%c0_5, %c0_6] : memref<256x1xf32, #tpu.memory_space<vmem>>, vector<256x1xf32>
    %6 = vector.broadcast %5 : vector<256x1xf32> to vector<256x4xf32>
    %7 = arith.addf %4, %6 : vector<256x4xf32>
    %8 = vector.shape_cast %7 : vector<256x4xf32> to vector<4x8x8x4xf32>
    %9 = tpu.transpose %8, [0, 1, 3, 2] : vector<4x8x8x4xf32> -> vector<4x8x4x8xf32>
    %10 = vector.shape_cast %9 : vector<4x8x4x8xf32> to vector<1x4x1x8x4x8xf32>
    %c0_7 = arith.constant 0 : index
    %c0_8 = arith.constant 0 : index
    %c0_9 = arith.constant 0 : index
    %c0_10 = arith.constant 0 : index
    %c0_11 = arith.constant 0 : index
    %c0_12 = arith.constant 0 : index
    %11 = vector.load %arg5[%c0_7, %c0_8, %c0_9, %c0_10, %c0_11, %c0_12] : memref<1x4x1x8x4x8xf32, #tpu.memory_space<vmem>>, vector<1x4x1x8x4x8xf32>
    tpu.vector_store %arg5[%c0_7, %c0_8, %c0_9, %c0_10, %c0_11, %c0_12], %10 {strides = array<i32>} : memref<1x4x1x8x4x8xf32, #tpu.memory_space<vmem>>, vector<1x4x1x8x4x8xf32>,
    return
  }
  func.func @transform_0(%arg0: i32, %arg1: i32) -> (i32, i32, i32, i32) {
    %c0_i32 = arith.constant 0 : i32
    %c0_i32_0 = arith.constant 0 : i32
    %c0_i32_1 = arith.constant 0 : i32
    return %arg0, %arg1, %c0_i32, %c0_i32_0 : i32, i32, i32, i32
  }
  func.func @transform_1(%arg0: i32, %arg1: i32) -> (i32, i32) {
    %c0_i32 = arith.constant 0 : i32
    %c0_i32_0 = arith.constant 0 : i32
    %c0_i32_1 = arith.constant 0 : i32
    return %c0_i32, %c0_i32_0 : i32, i32
  }
  func.func @transform_2(%arg0: i32, %arg1: i32) -> (i32, i32) {
    %c0_i32 = arith.constant 0 : i32
    %c0_i32_0 = arith.constant 0 : i32
    %c0_i32_1 = arith.constant 0 : i32
    return %c0_i32, %c0_i32_0 : i32, i32
  }
  func.func @transform_3(%arg0: i32, %arg1: i32) -> (i32, i32, i32, i32, i32, i32) {
    %c0_i32 = arith.constant 0 : i32
    %c0_i32_0 = arith.constant 0 : i32
    %c0_i32_1 = arith.constant 0 : i32
    %c0_i32_2 = arith.constant 0 : i32
    %c0_i32_3 = arith.constant 0 : i32
    return %arg0, %c0_i32, %arg1, %c0_i32_0, %c0_i32_1, %c0_i32_2 : i32, i32, i32, i32, i32, i32
  }
}

module attributes {stable_mosaic.version = 11 : i64} {
  func.func @_gemm_bias_kernel(%arg0: i32, %arg1: memref<16x32xf32, #tpu.memory_space<vmem>>, %arg2: memref<32x256xbf16, #tpu.memory_space<vmem>>, %arg3: memref<1x256xf32, #tpu.memory_space<vmem>>, %arg4: memref<16x256xf32, #tpu.memory_space<vmem>>) attributes {dimension_semantics = [#tpu.dimension_semantics<parallel>], iteration_bounds = array<i64: 2>, scalar_prefetch = 0 : i64, scratch_operands = 0 : i64, tpu.core_type = #tpu.core_type<tc>, window_params = [{transform_indices = @transform_0, window_bounds = array<i64: 16, 32>}, {pipeline_mode = #tpu.pipeline_mode<synchronous>, transform_indices = @transform_1, window_bounds = array<i64: 32, 256>}, {pipeline_mode = #tpu.pipeline_mode<synchronous>, transform_indices = @transform_2, window_bounds = array<i64: 1, 256>}, {transform_indices = @transform_3, window_bounds = array<i64: 16, 256>}]} {
    %c0 = arith.constant 0 : index
    %c0_0 = arith.constant 0 : index
    %0 = vector.load %arg1[%c0, %c0_0] : memref<16x32xf32, #tpu.memory_space<vmem>>, vector<16x32xf32>
    %1 = arith.truncf %0 : vector<16x32xf32> to vector<16x32xbf16>
    %c0_1 = arith.constant 0 : index
    %c0_2 = arith.constant 0 : index
    %2 = vector.load %arg2[%c0_1, %c0_2] : memref<32x256xbf16, #tpu.memory_space<vmem>>, vector<32x256xbf16>
    %cst = arith.constant dense<0.000000e+00> : vector<16x256xf32>
    %3 = tpu.matmul %1, %2, %cst {dimension_numbers = #tpu.dot_dimension_numbers<[1], [0], [0], [1], [0, 0, 1, 1], [], []>} : vector<16x32xbf16>, vector<32x256xbf16>, vector<16x256xf32> -> vector<16x256xf32>
    %c0_3 = arith.constant 0 : index
    %c0_4 = arith.constant 0 : index
    %4 = vector.load %arg3[%c0_3, %c0_4] : memref<1x256xf32, #tpu.memory_space<vmem>>, vector<1x256xf32>
    %5 = vector.broadcast %4 : vector<1x256xf32> to vector<16x256xf32>
    %6 = arith.addf %3, %5 : vector<16x256xf32>
    %c0_5 = arith.constant 0 : index
    %c0_6 = arith.constant 0 : index
    %7 = vector.load %arg4[%c0_5, %c0_6] : memref<16x256xf32, #tpu.memory_space<vmem>>, vector<16x256xf32>
    tpu.vector_store %arg4[%c0_5, %c0_6], %6 {strides = array<i32>} : memref<16x256xf32, #tpu.memory_space<vmem>>, vector<16x256xf32>,
    return
  }
  func.func @transform_0(%arg0: i32) -> (i32, i32) {
    %c0_i32 = arith.constant 0 : i32
    %c0_i32_0 = arith.constant 0 : i32
    return %arg0, %c0_i32 : i32, i32
  }
  func.func @transform_1(%arg0: i32) -> (i32, i32) {
    %c0_i32 = arith.constant 0 : i32
    %c0_i32_0 = arith.constant 0 : i32
    %c0_i32_1 = arith.constant 0 : i32
    return %c0_i32, %c0_i32_0 : i32, i32
  }
  func.func @transform_2(%arg0: i32) -> (i32, i32) {
    %c0_i32 = arith.constant 0 : i32
    %c0_i32_0 = arith.constant 0 : i32
    %c0_i32_1 = arith.constant 0 : i32
    return %c0_i32, %c0_i32_0 : i32, i32
  }
  func.func @transform_3(%arg0: i32) -> (i32, i32) {
    %c0_i32 = arith.constant 0 : i32
    %c0_i32_0 = arith.constant 0 : i32
    return %arg0, %c0_i32 : i32, i32
  }
}

</mosaic_0001>

<bundles_post_ra>
// kernel: tpu_custom_call.1
= control target key start
LH: loop header
LB: loop body
LE: loop exit
PB: predicated region body
PF: predicated region fallthrough
CT: control target
= control target key end

     0   :  { %8 = vsyncpa [#allocation3], 0  ;;  %s2597_s0 = inlined_call_operand.vmem [shape: f32[2,4,32,4], index: 0, kind: input, shape index: {}]   ;;  %s2598_s1 = inlined_call_operand.vmem [shape: bf16[256,32], index: 1, kind: input, shape index: {}]   ;;  %s2599_s2 = inlined_call_operand.vmem [shape: f32[256,1], index: 2, kind: input, shape index: {}]   ;;  %s2600_s3 = inlined_call_operand.hbm [shape: f32[2,4,4,8,4,8], index: 3, kind: output, shape index: {}]  }
   0x1   :  { %10 = vsyncpa [#allocation3 + $0x1], 0  ;;  %s2210_s12 = smov 0   ;;  %s2212_s13 = smov 0  }
   0x2   :  { %s2214_s14 = smov 0   ;;  %s2216_s15 = smov 0  }
   0x3   :  { %s2218_s16 = smov 0   ;;  %s2220_s17 = smov 0  }
   0x4   :  { %s2222_s18 = smov 0   ;;  %s2224_s19 = smov 0  }
   0x5 LB: > { %s1905_s20 = sadd.s32 4294967295, %s2180_s19   ;;  %s1906_s21 = sadd.s32 4294967294, %s2180_s19   ;;  %s2180_s19 = sphi %s2224_s19, %s16_s19   ;;  %s2176_s18 = sphi %s2222_s18, %s2609_s18   ;;  %s2172_s17 = sphi %s2220_s17, %s2608_s17   ;;  %s2168_s16 = sphi %s2218_s16, %s2607_s16   ;;  %s2164_s15 = sphi %s2216_s15, %s2606_s15   ;;  %s2160_s14 = sphi %s2214_s14, %s2605_s14   ;;  %s2156_s13 = sphi %s2212_s13, %s2604_s13   ;;  %s2152_s12 = sphi %s2210_s12, %s2603_s12  }
   0x6   : > { %s25_s22 = sadd.s32 1, %s2172_s17  ;;  %s28_s23 = sadd.s32 1, %s2176_s18 }
   0x7   : > { %p26_p0 = scmp.ge.s32.totalorder %s25_s22, 4  ;;  %p117_p1 = scmp.ne.s32.totalorder %s2160_s14, %s2156_s13 }
   0x8   : > { %p118_p2 = scmp.eq.s32.totalorder %s1905_s20, 7  ;;  %p123_p5 = scmp.ne.s32.totalorder %s2156_s13, %s2152_s12 }
   0x9   : > { %s2611_s22 = smov (%p26_p0, %s25_s22), 0  ;;  %s2613_s23 = smov (!%p26_p0, %s28_s23), %s2176_s18 }
   0xa   : > { %s103_s24 = ssub.s32 %s2172_s17, %s2611_s22  ;;  %p2261_p3 = por %p118_p2, %p117_p1 }
   0xb   : > { %p30_p4 = scmp.ge.s32.totalorder %s2613_s23, 2  ;;  %p124_p6 = scmp.eq.s32.totalorder %s1906_s21, 7 }
   0xc   : > { %p1909_p7 = scmp.ge.s32.totalorder %s2180_s19, 1  ;;  %p160_p9 = scmp.lt.s32.totalorder %s2180_s19, 9 }
   0xd   : > { %s2615_s23 = smov (%p30_p4, %s2613_s23), 0  ;;  %p2270_p8 = por %p124_p6, %p123_p5 }
   0xe   : > { %s102_s27 = ssub.s32 %s2176_s18, %s2615_s23  ;;  %s107_s28 = sadd.s32 1, %s2160_s14 }
   0xf   : > { %s104_s29 = sor.u32 %s103_s24, %s102_s27  ;;  %p161_p10 = pnand %p1909_p7, %p160_p9 }
  0x10   : > { %p105_p11 = scmp.eq.s32.totalorder %s104_s29, 0  ;;  %v236_v0 = vld [vmem:[%s2599_s2] sm:$0xff] (!%p161_p10)  ;;  %p188_p12 = scmp.lt.s32.totalorder (!%p161_p10), %s2168_s16, 1  ;;  %v238_v1 = vld [vmem:[%s2599_s2 + $0x10] sm:$0xff] (!%p161_p10)  ;;  %v2182_v2 = vmov (!%p161_p10), 0   ;;  %vm508_vm0 = vcmask (!%p161_p10), 261120  }
  0x11   : > { %164 = sbr.rel (%p161_p10) target bundleno = 461 (0x1cd), region = 32  ;;  %p190_p13 = scmp.lt.s32.totalorder (!%p161_p10), %s2164_s15, 3  ;;  %2096 = vset.pattern.permute.xlu0 (!%p161_p10), %v2182_v2  ;;  %2097 = vset.pattern.permute.xlu1 (!%p161_p10), %v2182_v2  ;;  %v2098_v3 = vld [vmem:[%s2598_s1] sm:$0xff] (!%p161_p10)   ;;  %v237_v5 = vld [vmem:[%s2599_s2 + $0x8] sm:$0xff] (!%p161_p10)  ;;  %v239_v6 = vld [vmem:[%s2599_s2 + $0x18] sm:$0xff] (!%p161_p10)  ;;  %vm1742_vm1 = vcmask (!%p161_p10), 60416  }
  0x12   : > { %s2279_s30 = scalar_select %p105_p11, %s2160_s14, %s107_s28  }
  0x13   : > { %270 = vperm.xlu0 (!%p161_p10), %2096, %v236_v0   ;;  %280 = vperm.xlu1 (!%p161_p10), %2097, %v238_v1   ;;  %v2099_v4 = vld [vmem:[%s2598_s1 + $0x40] sm:$0xff] (!%p161_p10)   ;;  %v241_v8 = vld [vmem:[%s2599_s2 + $0x28] sm:$0xff] (!%p161_p10)  ;;  %v242_v15 = vld [vmem:[%s2599_s2 + $0x30] sm:$0xff] (!%p161_p10)  ;;  %s185_s20 = sand.u32 (!%p161_p10), 1, %s2156_s13  }
  0x14   : > { %1974 = vmatprep.mubr.msk.bf16.mxu0 (!%p161_p10), %vm508_vm0, %v2098_v3  ;;  %1990 = vmatprep.mubr.msk.bf16.mxu1 (!%p161_p10), %vm508_vm0, %v2099_v4  ;;  %v240_v7 = vld [vmem:[%s2599_s2 + $0x20] sm:$0xff] (!%p161_p10)  ;;  %v243_v16 = vld [vmem:[%s2599_s2 + $0x38] sm:$0xff] (!%p161_p10)  ;;  %v2100_v17 = vld [vmem:[%s2598_s1 + $0x8] sm:$0xff] (!%p161_p10)   ;;  %s1910_s24 = sshll.u32 (!%p161_p10), %s185_s20, 7 }
  0x15   : > { %v2101_v18 = vld [vmem:[%s2598_s1 + $0x48] sm:$0xff] (!%p161_p10)   ;;  %v244_v19 = vld [vmem:[%s2599_s2 + $0x40] sm:$0xff] (!%p161_p10)  ;;  %v2102_v21 = vld [vmem:[%s2598_s1 + $0x10] sm:$0xff] (!%p161_p10)   ;;  %s2481_s27 = scalar_lea.vmem (!%p161_p10), [#allocation2], %s1910_s24 }
  0x16   : > { %v245_v20 = vld [vmem:[%s2599_s2 + $0x48] sm:$0xff] (!%p161_p10)  ;;  %v2103_v22 = vld [vmem:[%s2598_s1 + $0x50] sm:$0xff] (!%p161_p10)   ;;  %v247_v24 = vld [vmem:[%s2599_s2 + $0x58] sm:$0xff] (!%p161_p10) }
  0x17   : > { %275 = vperm.xlu0 (!%p161_p10), %2096, %v237_v5   ;;  %285 = vperm.xlu1 (!%p161_p10), %2097, %v239_v6   ;;  %v246_v23 = vld [vmem:[%s2599_s2 + $0x50] sm:$0xff] (!%p161_p10)  ;;  %v2104_v25 = vld [vmem:[%s2598_s1 + $0x18] sm:$0xff] (!%p161_p10)   ;;  %v248_v27 = vld [vmem:[%s2599_s2 + $0x60] sm:$0xff] (!%p161_p10) }
  0x18   : > { %s189_s10 = scalar_select %p188_p12, %s2168_s16, 1  ;;  %v2105_v26 = vld [vmem:[%s2598_s1 + $0x58] sm:$0xff]   ;;  %v249_v28 = vld [vmem:[%s2599_s2 + $0x68] sm:$0xff]  ;;  %v2106_v29 = vld [vmem:[%s2598_s1 + $0x20] sm:$0xff]  }
  0x19   : > { %s191_s21 = scalar_select %p190_p13, %s2164_s15, 3  ;;  %v2107_v30 = vld [vmem:[%s2598_s1 + $0x60] sm:$0xff]   ;;  %v250_v31 = vld [vmem:[%s2599_s2 + $0x70] sm:$0xff]  ;;  %v251_v32 = vld [vmem:[%s2599_s2 + $0x78] sm:$0xff] }
  0x1a   : > { %s1912_s4 = sshll.u32 %s189_s10, 4  ;;  %v2108_v33 = vld [vmem:[%s2598_s1 + $0x28] sm:$0xff]   ;;  %v252_v35 = vld [vmem:[%s2599_s2 + $0x80] sm:$0xff]  ;;  %v2110_v37 = vld [vmem:[%s2598_s1 + $0x30] sm:$0xff]  }
  0x1b   : > { %s1911_s5 = sshll.u32 %s191_s21, 2  ;;  %290 = vperm.xlu0 %2096, %v240_v7   ;;  %295 = vperm.xlu1 %2097, %v241_v8   ;;  %v2109_v34 = vld [vmem:[%s2598_s1 + $0x68] sm:$0xff]   ;;  %v2111_v38 = vld [vmem:[%s2598_s1 + $0x70] sm:$0xff]   ;;  %v255_v40 = vld [vmem:[%s2599_s2 + $0x98] sm:$0xff] }
  0x1c   : > { %s194_s6 = sadd.s32 %s1912_s4, %s1911_s5  ;;  %v253_v36 = vld [vmem:[%s2599_s2 + $0x88] sm:$0xff]  ;;  %v254_v39 = vld [vmem:[%s2599_s2 + $0x90] sm:$0xff]  ;;  %v2112_v41 = vld [vmem:[%s2598_s1 + $0x38] sm:$0xff]  }
  0x1d   : > { %s1913_s9 = sshll.u32 %s194_s6, 3  ;;  %v2113_v42 = vld [vmem:[%s2598_s1 + $0x78] sm:$0xff]   ;;  %v256_v43 = vld [vmem:[%s2599_s2 + $0xa0] sm:$0xff]  ;;  %v257_v44 = vld [vmem:[%s2599_s2 + $0xa8] sm:$0xff] }
  0x1e   : > { %s196_s28 = scalar_lea.vmem %s2597_s0, %s1913_s9  ;;  %v258_v45 = vld [vmem:[%s2599_s2 + $0xb0] sm:$0xff]  ;;  %v259_v46 = vld [vmem:[%s2599_s2 + $0xb8] sm:$0xff]  ;;  %v260_v47 = vld [vmem:[%s2599_s2 + $0xc0] sm:$0xff] }
  0x1f   : > { %v198_v9 = vld [vmem:[%s196_s28] sm:$0xff]  ;;  %v199_v10 = vld [vmem:[%s196_s28 + $0x8] sm:$0xff]  ;;  %v200_v11 = vld [vmem:[%s196_s28 + $0x10] sm:$0xff]  ;;  %300 = vperm.xlu0 %2096, %v242_v15   ;;  %305 = vperm.xlu1 %2097, %v243_v16  }
  0x20   : > { %v202_v12 = vpack.c.bf16 %v199_v10, %v198_v9  ;;  %v201_v13 = vld [vmem:[%s196_s28 + $0x18] sm:$0xff]  ;;  %v261_v48 = vld [vmem:[%s2599_s2 + $0xc8] sm:$0xff]  ;;  %v262_v49 = vld [vmem:[%s2599_s2 + $0xd0] sm:$0xff]  ;;  %s1776_s28 = scalar_lea.sflag [#allocation3], %s185_s20 }
  0x21   : > { %v203_v14 = vpack.c.bf16 %v201_v13, %v200_v11  ;;  %v263_v50 = vld [vmem:[%s2599_s2 + $0xd8] sm:$0xff]  ;;  %v264_v51 = vld [vmem:[%s2599_s2 + $0xe0] sm:$0xff]  ;;  %v265_v52 = vld [vmem:[%s2599_s2 + $0xe8] sm:$0xff] }
  0x22   : > { %1970 = vmatprep.subr.bf16.mxu0 %v202_v12  ;;  %2006 = vmatprep.subr.bf16.mxu1 %v202_v12  ;;  %v266_v53 = vld [vmem:[%s2599_s2 + $0xf0] sm:$0xff]  ;;  %v267_v54 = vld [vmem:[%s2599_s2 + $0xf8] sm:$0xff] }
  0x23   : > { %1971 = vmatpush3.bf16.msra.mxu0 %v202_v12  ;;  %2008 = vmatpush3.bf16.msra.mxu1 %v202_v12 }
  0x24   : > { %1972 = vmatprep.subr.bf16.mxu0 %v203_v14  ;;  %2007 = vmatprep.subr.bf16.mxu1 %v203_v14 }
  0x25   : > { %310 = vperm.xlu0 %2096, %v244_v19   ;;  %315 = vperm.xlu1 %2097, %v245_v20  }
  0x27   : > { %1973 = vmatpush3.bf16.msra.mxu0 %v203_v14  ;;  %2009 = vmatpush3.bf16.msra.mxu1 %v203_v14 }
  0x29   : > { %320 = vperm.xlu0 %2096, %v246_v23   ;;  %325 = vperm.xlu1 %2097, %v247_v24  }
  0x2a   : > { %1975 = vmatmul.mubr.msk.bf16.vlgmr.msra.gmra.mrb[0].mxu0 %vm508_vm0, %v2100_v17  ;;  %1991 = vmatmul.mubr.msk.bf16.vlgmr.msra.gmra.mrb[0].mxu1 %vm508_vm0, %v2101_v18 }
  0x2b   : > { %1978 = vmatprep.mubr.msk.bf16.mxu0 %vm508_vm0, %v2102_v21  ;;  %1994 = vmatprep.mubr.msk.bf16.mxu1 %vm508_vm0, %v2103_v22 }
  0x2d   : > { %330 = vperm.xlu0 %2096, %v248_v27   ;;  %335 = vperm.xlu1 %2097, %v249_v28  }
  0x31   : > { %340 = vperm.xlu0 %2096, %v250_v31   ;;  %345 = vperm.xlu1 %2097, %v251_v32  }
  0x32   : > { %1979 = vmatmul.mubr.msk.bf16.gmra.mrb[4].mxu0 %vm508_vm0, %v2104_v25  ;;  %1995 = vmatmul.mubr.msk.bf16.gmra.mrb[4].mxu1 %vm508_vm0, %v2105_v26 }
  0x33   : > { %1982 = vmatprep.mubr.msk.bf16.mxu0 %vm508_vm0, %v2106_v29  ;;  %1998 = vmatprep.mubr.msk.bf16.mxu1 %vm508_vm0, %v2107_v30 }
  0x35   : > { %350 = vperm.xlu0 %2096, %v252_v35   ;;  %355 = vperm.xlu1 %2097, %v253_v36  }
  0x39   : > { %360 = vperm.xlu0 %2096, %v254_v39   ;;  %365 = vperm.xlu1 %2097, %v255_v40  }
  0x3a   : > { %1983 = vmatmul.mubr.msk.bf16.gmra.mrb[8].mxu0 %vm508_vm0, %v2108_v33  ;;  %1999 = vmatmul.mubr.msk.bf16.gmra.mrb[8].mxu1 %vm508_vm0, %v2109_v34 }
  0x3b   : > { %1986 = vmatprep.mubr.msk.bf16.mxu0 %vm508_vm0, %v2110_v37  ;;  %2002 = vmatprep.mubr.msk.bf16.mxu1 %vm508_vm0, %v2111_v38 }
  0x3d   : > { %370 = vperm.xlu0 %2096, %v256_v43   ;;  %375 = vperm.xlu1 %2097, %v257_v44  }
  0x41   : > { %380 = vperm.xlu0 %2096, %v258_v45   ;;  %385 = vperm.xlu1 %2097, %v259_v46  }
  0x42   : > { %1987 = vmatmul.mubr.msk.bf16.gmra.mrb[12].mxu0 %vm508_vm0, %v2112_v41  ;;  %2003 = vmatmul.mubr.msk.bf16.gmra.mrb[12].mxu1 %vm508_vm0, %v2113_v42 }
  0x45   : > { %390 = vperm.xlu0 %2096, %v260_v47   ;;  %395 = vperm.xlu1 %2097, %v261_v48  }
  0x49   : > { %400 = vperm.xlu0 %2096, %v262_v49   ;;  %405 = vperm.xlu1 %2097, %v263_v50  }
  0x4d   : > { %410 = vperm.xlu0 %2096, %v264_v51   ;;  %415 = vperm.xlu1 %2097, %v265_v52  }
  0x51   : > { %420 = vperm.xlu0 %2096, %v266_v53   ;;  %425 = vperm.xlu1 %2097, %v267_v54  }
  0x92   : > { %v281_v55 = vpop.permute.xlu1 %280  ;;  %v271_v56 = vpop.permute.xlu0 %270 }
  0x96   : > { %v286_v57 = vpop.permute.xlu1 %285  ;;  %v276_v58 = vpop.permute.xlu0 %275 }
  0x9a   : > { %v2448_v59 = vpop.permute.xlu1 %295  ;;  %v2450_v60 = vpop.permute.xlu0 %290 }
  0x9e   : > { %v306_v61 = vpop.permute.xlu1 %305  ;;  %v301_v62 = vpop.permute.xlu0 %300 }
  0xa4   : > { %v2452_v63 = vpop.permute.xlu1 %315  ;;  %v2454_v0 = vpop.permute.xlu0 %310 }
  0xa8   : > { %v2456_v1 = vpop.permute.xlu1 %325  ;;  %v2458_v2 = vpop.permute.xlu0 %320 }
  0xac   : > { %v2460_v3 = vpop.permute.xlu1 %335  ;;  %v2462_v4 = vpop.permute.xlu0 %330 }
  0xb0   : > { %v2464_v5 = vpop.permute.xlu1 %345  ;;  %v2466_v6 = vpop.permute.xlu0 %340 }
  0xb4   : > { %v356_v7 = vpop.permute.xlu1 %355  ;;  %v351_v8 = vpop.permute.xlu0 %350 }
  0xb8   : > { %v366_v9 = vpop.permute.xlu1 %365  ;;  %v361_v20 = vpop.permute.xlu0 %360 }
  0xbc   : > { %v376_v22 = vpop.permute.xlu1 %375  ;;  %v371_v35 = vpop.permute.xlu0 %370 }
  0xc0   : > { %v386_v36 = vpop.permute.xlu1 %385  ;;  %v381_v49 = vpop.permute.xlu0 %380 }
  0xfd   : > { %v1976_v10 = vpop.f32.mrb[0].mxu0  ;;  %v1992_v11 = vpop.f32.mrb[0].mxu1 }
  0xfe   : > { %v600_v12 = vadd.f32 %v1976_v10, %v281_v55  ;;  %v591_v13 = vpop.f32.mrb[1].mxu0  ;;  %v655_v14 = vpop.f32.mrb[1].mxu1  ;;  %v664_v21 = vadd.f32 %v1992_v11, %v361_v20 }
  0xff   : > { %v1977_v15 = vpop.f32.mrb[2].mxu0  ;;  %v1993_v16 = vpop.f32.mrb[2].mxu1  ;;  %v592_v26 = vadd.f32 %v591_v13, %v271_v56  ;;  %v656_v34 = vadd.f32 %v655_v14, %v351_v8 }
 0x100   : > { %v667_v17 = vadd.f32 %v1993_v16, %v366_v9  ;;  %v658_v18 = vpop.f32.mrb[3].mxu1  ;;  %782 = vxpose.xlu0.b32.start.end [1/1] (short) (narrow) %v600_v12, 8  ;;  %v594_v19 = vpop.f32.mrb[3].mxu0  ;;  %v603_v40 = vadd.f32 %v1977_v15, %v286_v57 }
 0x101   : > { %v595_v23 = vadd.f32 %v594_v19, %v276_v58  ;;  %v659_v31 = vadd.f32 %v658_v18, %v356_v7  ;;  %v391_v11 = vpop.permute.xlu0 %390 }
 0x102   : > { %1326 = vxpose.xlu1.b32.start.end [1/1] (short) (narrow) %v667_v17, 8 }
 0x104   : > { %1294 = vxpose.xlu0.b32.start.end [1/1] (short) (narrow) %v664_v21, 8 }
 0x105   : > { %v1980_v24 = vpop.f32.mrb[4].mxu0  ;;  %v1996_v25 = vpop.f32.mrb[4].mxu1 }
 0x106   : > { %v607_v27 = vpop.f32.mrb[5].mxu0  ;;  %v671_v28 = vpop.f32.mrb[5].mxu1  ;;  %750 = vxpose.xlu1.b32.start.end [1/1] (short) (narrow) %v595_v23, 8  ;;  %v616_v48 = vadd.f32 %v1980_v24, %v301_v62  ;;  %v680_v53 = vadd.f32 %v1996_v25, %v381_v49 }
 0x107   : > { %v1981_v29 = vpop.f32.mrb[6].mxu0  ;;  %v1997_v30 = vpop.f32.mrb[6].mxu1  ;;  %v608_v9 = vadd.f32 %v607_v27, %v2450_v60  ;;  %v672_v10 = vadd.f32 %v671_v28, %v371_v35 }
 0x108   : > { %v610_v32 = vpop.f32.mrb[7].mxu0  ;;  %v674_v33 = vpop.f32.mrb[7].mxu1  ;;  %718 = vxpose.xlu0.b32.start.end [1/1] (short) (narrow) %v592_v26, 8  ;;  %v619_v37 = vadd.f32 %v1981_v29, %v306_v61  ;;  %v683_v45 = vadd.f32 %v1997_v30, %v386_v36 }
 0x109   : > { %v611_v50 = vadd.f32 %v610_v32, %v2448_v59  ;;  %v675_v61 = vadd.f32 %v674_v33, %v376_v22  ;;  %v396_v62 = vpop.permute.xlu1 %395  ;;  %v401_v15 = vpop.permute.xlu0 %400 }
 0x10a   : > { %1262 = vxpose.xlu1.b32.start.end [1/1] (short) (narrow) %v659_v31, 8 }
 0x10c   : > { %1230 = vxpose.xlu0.b32.start.end [1/1] (short) (narrow) %v656_v34, 8 }
 0x10d   : > { %v1984_v38 = vpop.f32.mrb[8].mxu0  ;;  %v2000_v39 = vpop.f32.mrb[8].mxu1 }
 0x10e   : > { %v623_v41 = vpop.f32.mrb[9].mxu0  ;;  %v687_v42 = vpop.f32.mrb[9].mxu1  ;;  %942 = vxpose.xlu1.b32.start.end [1/1] (short) (narrow) %v619_v37, 8  ;;  %v696_v16 = vadd.f32 %v2000_v39, %v401_v15 }
 0x10f   : > { %v1985_v43 = vpop.f32.mrb[10].mxu0  ;;  %v2001_v44 = vpop.f32.mrb[10].mxu1  ;;  %v688_v18 = vadd.f32 %v687_v42, %v391_v11 }
 0x110   : > { %v626_v46 = vpop.f32.mrb[11].mxu0  ;;  %v690_v47 = vpop.f32.mrb[11].mxu1  ;;  %814 = vxpose.xlu0.b32.start.end [1/1] (short) (narrow) %v603_v40, 8  ;;  %v635_v59 = vadd.f32 %v1985_v43, %v2456_v1  ;;  %v624_v1 = vadd.f32 %v623_v41, %v2454_v0 }
 0x111   : > { %v406_v12 = vpop.permute.xlu1 %405  ;;  %v627_v14 = vadd.f32 %v626_v46, %v2452_v63  ;;  %v691_v60 = vadd.f32 %v690_v47, %v396_v62  ;;  %v411_v21 = vpop.permute.xlu0 %410 }
 0x112   : > { %1454 = vxpose.xlu1.b32.start.end [1/1] (short) (narrow) %v683_v45, 8  ;;  %v699_v13 = vadd.f32 %v2001_v44, %v406_v12 }
 0x114   : > { %910 = vxpose.xlu0.b32.start.end [1/1] (short) (narrow) %v616_v48, 8 }
 0x115   : > { %v1988_v51 = vpop.f32.mrb[12].mxu0  ;;  %v2004_v52 = vpop.f32.mrb[12].mxu1 }
 0x116   : > { %v639_v54 = vpop.f32.mrb[13].mxu0  ;;  %v703_v55 = vpop.f32.mrb[13].mxu1  ;;  %878 = vxpose.xlu1.b32.start.end [1/1] (short) (narrow) %v611_v50, 8  ;;  %v648_v63 = vadd.f32 %v1988_v51, %v2466_v6 }
 0x117   : > { %v640_v56 = vadd.f32 %v639_v54, %v2462_v4  ;;  %v1989_v57 = vpop.f32.mrb[14].mxu0  ;;  %v2005_v58 = vpop.f32.mrb[14].mxu1  ;;  %v632_v4 = vadd.f32 %v1984_v38, %v2458_v2  ;;  %v704_v23 = vadd.f32 %v703_v55, %v411_v21 }
 0x118   : > { %v642_v7 = vpop.f32.mrb[15].mxu0  ;;  %v706_v8 = vpop.f32.mrb[15].mxu1  ;;  %1422 = vxpose.xlu0.b32.start.end [1/1] (short) (narrow) %v680_v53, 8  ;;  %v651_v17 = vadd.f32 %v1989_v57, %v2464_v5 }
 0x119   : > { %v643_v19 = vadd.f32 %v642_v7, %v2460_v3  ;;  %v416_v2 = vpop.permute.xlu1 %415  ;;  %v421_v5 = vpop.permute.xlu0 %420 }
 0x11a   : > { %1390 = vxpose.xlu1.b32.start.end [1/1] (short) (narrow) %v675_v61, 8  ;;  %v707_v20 = vadd.f32 %v706_v8, %v416_v2  ;;  %v712_v24 = vadd.f32 %v2004_v52, %v421_v5 }
 0x11c   : > { %846 = vxpose.xlu0.b32.start.end [1/1] (short) (narrow) %v608_v9, 8 }
 0x11d   : > { %v426_v22 = vpop.permute.xlu1 %425 }
 0x11e   : > { %1070 = vxpose.xlu1.b32.start.end [1/1] (short) (narrow) %v635_v59, 8  ;;  %v715_v0 = vadd.f32 %v2005_v58, %v426_v22 }
 0x120   : > { %1358 = vxpose.xlu0.b32.start.end [1/1] (short) (narrow) %v672_v10, 8 }
 0x122   : > { %1582 = vxpose.xlu1.b32.start.end [1/1] (short) (narrow) %v699_v13, 8 }
 0x124   : > { %1038 = vxpose.xlu0.b32.start.end [1/1] (short) (narrow) %v632_v4, 8 }
 0x126   : > { %1006 = vxpose.xlu1.b32.start.end [1/1] (short) (narrow) %v627_v14, 8 }
 0x128   : > { %1550 = vxpose.xlu0.b32.start.end [1/1] (short) (narrow) %v696_v16, 8 }
 0x12a   : > { %1518 = vxpose.xlu1.b32.start.end [1/1] (short) (narrow) %v691_v60, 8 }
 0x12c   : > { %974 = vxpose.xlu0.b32.start.end [1/1] (short) (narrow) %v624_v1, 8 }
 0x12e   : > { %1198 = vxpose.xlu1.b32.start.end [1/1] (short) (narrow) %v651_v17, 8 }
 0x130   : > { %1486 = vxpose.xlu0.b32.start.end [1/1] (short) (narrow) %v688_v18, 8 }
 0x132   : > { %1134 = vxpose.xlu1.b32.start.end [1/1] (short) (narrow) %v643_v19, 8 }
 0x134   : > { %1166 = vxpose.xlu0.b32.start.end [1/1] (short) (narrow) %v648_v63, 8 }
 0x136   : > { %1646 = vxpose.xlu1.b32.start.end [1/1] (short) (narrow) %v707_v20, 8 }
 0x138   : > { %1102 = vxpose.xlu0.b32.start.end [1/1] (short) (narrow) %v640_v56, 8 }
 0x13a   : > { %1710 = vxpose.xlu1.b32.start.end [1/1] (short) (narrow) %v715_v0, 8 }
 0x13c   : > { %1614 = vxpose.xlu0.b32.start.end [1/1] (short) (narrow) %v704_v23, 8 }
 0x140   : > { %1678 = vxpose.xlu0.b32.start.end [1/1] (short) (narrow) %v712_v24, 8 }
 0x180   : > { %v798_v3 = vpop.trf.xlu0 }
 0x181   : > { %1745 = vst.msk [vmem:[%s2481_s27 + $0x8] sm:$0xf] %vm1742_vm1, %v798_v3 }
 0x182   : > { %v1342_v6 = vpop.trf.xlu1 }
 0x183   : > { %1762 = vst.msk [vmem:[%s2481_s27 + $0x4c] sm:$0xf] %vm1742_vm1, %v1342_v6 }
 0x184   : > { %v1310_v25 = vpop.trf.xlu0 }
 0x185   : > { %1761 = vst.msk [vmem:[%s2481_s27 + $0x48] sm:$0xf] %vm1742_vm1, %v1310_v25 }
 0x186   : > { %v766_v26 = vpop.trf.xlu1 }
 0x187   : > { %1744 = vst.msk [vmem:[%s2481_s27 + $0x4] sm:$0xf] %vm1742_vm1, %v766_v26 }
 0x188   : > { %v734_v27 = vpop.trf.xlu0 }
 0x189   : > { %1743 = vst.msk [vmem:[%s2481_s27] sm:$0xf] %vm1742_vm1, %v734_v27 }
 0x18a   : > { %v1278_v28 = vpop.trf.xlu1 }
 0x18b   : > { %1760 = vst.msk [vmem:[%s2481_s27 + $0x44] sm:$0xf] %vm1742_vm1, %v1278_v28 }
 0x18c   : > { %v1246_v29 = vpop.trf.xlu0 }
 0x18d   : > { %1759 = vst.msk [vmem:[%s2481_s27 + $0x40] sm:$0xf] %vm1742_vm1, %v1246_v29 }
 0x18e   : > { %v958_v30 = vpop.trf.xlu1 }
 0x18f   : > { %1750 = vst.msk [vmem:[%s2481_s27 + $0x1c] sm:$0xf] %vm1742_vm1, %v958_v30 }
 0x190   : > { %v830_v31 = vpop.trf.xlu0 }
 0x191   : > { %1746 = vst.msk [vmem:[%s2481_s27 + $0xc] sm:$0xf] %vm1742_vm1, %v830_v31 }
 0x192   : > { %v1470_v32 = vpop.trf.xlu1 }
 0x193   : > { %1766 = vst.msk [vmem:[%s2481_s27 + $0x5c] sm:$0xf] %vm1742_vm1, %v1470_v32 }
 0x194   : > { %v926_v33 = vpop.trf.xlu0 }
 0x195   : > { %1749 = vst.msk [vmem:[%s2481_s27 + $0x18] sm:$0xf] %vm1742_vm1, %v926_v33 }
 0x196   : > { %v894_v34 = vpop.trf.xlu1 }
 0x197   : > { %1748 = vst.msk [vmem:[%s2481_s27 + $0x14] sm:$0xf] %vm1742_vm1, %v894_v34 }
 0x198   : > { %v1438_v35 = vpop.trf.xlu0 }
 0x199   : > { %1765 = vst.msk [vmem:[%s2481_s27 + $0x58] sm:$0xf] %vm1742_vm1, %v1438_v35 }
 0x19a   : > { %v1406_v36 = vpop.trf.xlu1 }
 0x19b   : > { %1764 = vst.msk [vmem:[%s2481_s27 + $0x54] sm:$0xf] %vm1742_vm1, %v1406_v36 }
 0x19c   : > { %v862_v37 = vpop.trf.xlu0 }
 0x19d   : > { %1747 = vst.msk [vmem:[%s2481_s27 + $0x10] sm:$0xf] %vm1742_vm1, %v862_v37 }
 0x19e   : > { %v1086_v38 = vpop.trf.xlu1 }
 0x19f   : > { %1754 = vst.msk [vmem:[%s2481_s27 + $0x2c] sm:$0xf] %vm1742_vm1, %v1086_v38 }
 0x1a0   : > { %v1374_v39 = vpop.trf.xlu0 }
 0x1a1   : > { %1763 = vst.msk [vmem:[%s2481_s27 + $0x50] sm:$0xf] %vm1742_vm1, %v1374_v39 }
 0x1a2   : > { %v1598_v40 = vpop.trf.xlu1 }
 0x1a3   : > { %1770 = vst.msk [vmem:[%s2481_s27 + $0x6c] sm:$0xf] %vm1742_vm1, %v1598_v40 }
 0x1a4   : > { %v1054_v41 = vpop.trf.xlu0 }
 0x1a5   : > { %1753 = vst.msk [vmem:[%s2481_s27 + $0x28] sm:$0xf] %vm1742_vm1, %v1054_v41 }
 0x1a6   : > { %v1022_v42 = vpop.trf.xlu1 }
 0x1a7   : > { %1752 = vst.msk [vmem:[%s2481_s27 + $0x24] sm:$0xf] %vm1742_vm1, %v1022_v42 }
 0x1a8   : > { %v1566_v43 = vpop.trf.xlu0 }
 0x1a9   : > { %1769 = vst.msk [vmem:[%s2481_s27 + $0x68] sm:$0xf] %vm1742_vm1, %v1566_v43 }
 0x1aa   : > { %v1534_v44 = vpop.trf.xlu1 }
 0x1ab   : > { %1768 = vst.msk [vmem:[%s2481_s27 + $0x64] sm:$0xf] %vm1742_vm1, %v1534_v44 }
 0x1ac   : > { %v990_v45 = vpop.trf.xlu0 }
 0x1ad   : > { %1751 = vst.msk [vmem:[%s2481_s27 + $0x20] sm:$0xf] %vm1742_vm1, %v990_v45 }
 0x1ae   : > { %v1214_v46 = vpop.trf.xlu1 }
 0x1af   : > { %1758 = vst.msk [vmem:[%s2481_s27 + $0x3c] sm:$0xf] %vm1742_vm1, %v1214_v46 }
 0x1b0   : > { %v1502_v47 = vpop.trf.xlu0 }
 0x1b1   : > { %1767 = vst.msk [vmem:[%s2481_s27 + $0x60] sm:$0xf] %vm1742_vm1, %v1502_v47 }
 0x1b2   : > { %v1150_v48 = vpop.trf.xlu1 }
 0x1b3   : > { %1756 = vst.msk [vmem:[%s2481_s27 + $0x34] sm:$0xf] %vm1742_vm1, %v1150_v48 }
 0x1b4   : > { %v1182_v49 = vpop.trf.xlu0 }
 0x1b5   : > { %1757 = vst.msk [vmem:[%s2481_s27 + $0x38] sm:$0xf] %vm1742_vm1, %v1182_v49 }
 0x1b6   : > { %v1662_v50 = vpop.trf.xlu1 }
 0x1b7   : > { %1772 = vst.msk [vmem:[%s2481_s27 + $0x74] sm:$0xf] %vm1742_vm1, %v1662_v50 }
 0x1b8   : > { %v1118_v51 = vpop.trf.xlu0 }
 0x1b9   : > { %1755 = vst.msk [vmem:[%s2481_s27 + $0x30] sm:$0xf] %vm1742_vm1, %v1118_v51 }
 0x1ba   : > { %v1726_v52 = vpop.trf.xlu1 }
 0x1bb   : > { %1774 = vst.msk [vmem:[%s2481_s27 + $0x7c] sm:$0xf] %vm1742_vm1, %v1726_v52 }
 0x1bc   : > { %v1630_v53 = vpop.trf.xlu0 }
 0x1bd   : > { %1771 = vst.msk [vmem:[%s2481_s27 + $0x70] sm:$0xf] %vm1742_vm1, %v1630_v53 }
 0x1c0   : > { %v1694_v54 = vpop.trf.xlu0 }
 0x1c1   : > { %1773 = vst.msk [vmem:[%s2481_s27 + $0x78] sm:$0xf] %vm1742_vm1, %v1694_v54 }
 0x1c2   : > { %s1947_s10 = sshll.u32 %s2164_s15, 3  ;;  %s1948_s21 = sshll.u32 %s2168_s16, 7 }
 0x1c3   : > { %s1788_s29 = sadd.s32 %s1948_s21, %s1947_s10  ;;  %s1807_s4 = sshll.u32 %s2481_s27, 4  ;;  %s1808_s4 = int_to_ptr.vmem [resolvable:$true] %s1807_s4 }
 0x1c4   : > { %s1949_s5 = sshll.u32 %s1788_s29, 6  ;;  %s2183_s9 = smov 512  }
 0x1c5   : > { %s1790_s8 = scalar_lea.hbm %s2600_s3, %s1949_s5  ;;  %2010 = sst [smem:[#allocation5]] (%p2261_p3), %s2183_s9 }
 0x1c6   : > { %s2184_s11 = smov 2048   ;;  %s2185_s20 = smov 8  }
 0x1c7   : > { %2011 = sst [smem:[#allocation5 + $0x1]] (%p2261_p3), %s2184_s11  ;;  %s2186_s15 = smov 64  }
 0x1c8   : > { %2012 = sst [smem:[#allocation5 + $0x2]] (%p2261_p3), %s2185_s20  ;;  %s2187_s16 = smov 4  }
 0x1c9   : > { %2013 = sst [smem:[#allocation5 + $0x3]] (%p2261_p3), %s2186_s15  ;;  %s2188_s24 = smov [#allocation4]  }
 0x1ca   : > { %2014 = sst [smem:[#allocation5 + $0x4]] (%p2261_p3), %s2186_s15  ;;  %s2189_s27 = smov 0  }
 0x1cb   : > { %2015 = sst [smem:[#allocation5 + $0x5]] (%p2261_p3), %s2187_s16 }
 0x1cc   : > { %2016 = dma.general (%p2261_p3), %s1808_s4, 2048, %s1790_s8, %s1776_s28, %s2188_s24, [#allocation5], %s2189_s27, 0  }
 0x1cd PF: > { %p2022_p0 = scmp.ge.s32.totalorder %s2180_s19, 2  ;;  %s1835_s10 = sand.u32 1, %s2152_s12  }
 0x1ce   : > { %s1836_s21 = scalar_lea.sflag [#allocation3], %s1835_s10 }
 0x1cf   : > { %p2019_p1 = pnand %p2022_p0, %p2270_p8 }
 0x1d1   : > { %2147 = dma.done.wait (!%p2019_p1), %s1836_s21, 2048  }
 0x1d2   : > { %2149 = vsyncadd (!%p2019_p1), %s1836_s21, 4294965248  ;;  %s16_s19 = sadd.s32 1, %s2180_s19   ;;  %s2603_s12 = smov %s2156_s13 }
 0x1d3   : > { %p13_p2 = scmp.ge.s32.totalorder %s16_s19, 10   ;;  %s2604_s13 = smov %s2160_s14 }
 0x1d4   : > { %s2605_s14 = smov %s2279_s30  ;;  %s2606_s15 = smov %s2172_s17 }
 0x1d5   : > { %s2607_s16 = smov %s2176_s18  ;;  %s2608_s17 = smov %s2611_s22 }
 0x1d6   : > { %s2609_s18 = smov %s2615_s23  ;;  %15 = sbr.rel (!%p13_p2) target bundleno = 5 (0x5), region = 72 }
 0x1dd   :  { %1841 = vsyncpa [#allocation3], 1 }
 0x1de   :  { %1843 = vsyncpa [#allocation3 + $0x1], 1 }

// kernel: tpu_custom_call.1
= control target key start
LH: loop header
LB: loop body
LE: loop exit
PB: predicated region body
PF: predicated region fallthrough
CT: control target
= control target key end

     0   :  { %8 = vsyncpa [#allocation3], 0  ;;  %s857_s0 = inlined_call_operand.hbm [shape: f32[32,32], index: 0, kind: input, shape index: {}]   ;;  %s858_s1 = inlined_call_operand.hbm [shape: bf16[32,256], index: 1, kind: input, shape index: {}]   ;;  %s859_s2 = inlined_call_operand.vmem [shape: f32[1,256], index: 2, kind: input, shape index: {}]   ;;  %s860_s3 = inlined_call_operand.hbm [shape: f32[32,256], index: 3, kind: output, shape index: {}]  }
   0x1   :  { %10 = vsyncpa [#allocation3 + $0x1], 0 }
   0x2   :  { %11 = vsyncpa [#allocation6], 0 }
   0x3   :  { %12 = vsyncpa [#allocation4], 0 }
   0x4   :  { %14 = vsyncpa [#allocation4 + $0x1], 0  ;;  %s646_s12 = smov 0   ;;  %s648_s13 = smov 0  }
   0x5   :  { %s650_s14 = smov 0   ;;  %s652_s15 = smov 0  }
   0x6 LB: > { %s667_s16 = sadd.s32 4294967295, %s616_s15   ;;  %s395_s17 = sadd.s32 4294967294, %s616_s15   ;;  %s616_s15 = sphi %s652_s15, %s880_s15   ;;  %s612_s14 = sphi %s650_s14, %s879_s14   ;;  %s608_s13 = sphi %s648_s13, %s878_s13   ;;  %s604_s12 = sphi %s646_s12, %s877_s12  }
   0x7   : > { %p40_p0 = scmp.ne.s32.totalorder %s608_s13, %s604_s12  ;;  %p861_p1 = scmp.eq.s32.totalorder %s667_s16, 0 }
   0x8   : > { %p112_p3 = scmp.eq.s32.totalorder %s395_s17, 1  ;;  %p396_p5 = scmp.ge.s32.totalorder %s616_s15, 1 }
   0x9   : > { %p676_p4 = por %p861_p1, %p40_p0  ;;  %p119_p7 = scmp.lt.s32.totalorder %s616_s15, 3 }
   0xa   : > { %p681_p6 = por %p112_p3, %p40_p0  ;;  %s618_s21 = smov [#allocation5]  }
   0xb   : > { %s864_s18 = scalar_select %p676_p4, 1, 0 }
   0xc   : > { %s865_s19 = scalar_select %p681_p6, 1, 0 }
   0xd   : > { %p686_p8 = pnand %p396_p5, %p119_p7  ;;  %s131_s22 = sshll.u32 %s618_s21, 4  ;;  %s690_s22 = int_to_ptr.vmem [resolvable:$true] %s131_s22 }
   0xe   : > { %s702_s24 = sadd.s32 1, %s616_s15   ;;  %s27_s25 = sadd.s32 1, %s612_s14 }
   0xf   : > { %s866_s20 = scalar_select %p686_p8, 1, 0 }
  0x10   : > { %p428_p9 = pneg %p686_p8  ;;  %s24_s26 = ssub.s32 %s616_s15, %s702_s24 }
  0x11   : > { %s488_s29 = scalar_lea.hbm %s858_s1, 512 }
  0x12   : > { %p697_p11 = pnand %p428_p9, %p861_p1  ;;  %p489_p12 = scmp.ne.s32.totalorder %s858_s1, %s488_s29 }
  0x13   : > { %p495_p5 = scmp.lt.u32.totalorder %s488_s29, %s858_s1 }
  0x14   : > { %p490_p13 = pneg %p697_p11 }
  0x16   : > { %p491_p0 = pnand %p490_p13, %p489_p12 }
  0x18   : > { %p492_p3 = pneg %p491_p0 }
  0x1a   : > { %p497_p7 = pnand %p495_p5, %p492_p3 }
  0x1c   : > { %500 = shalt.err (!%p497_p7)
}
  0x1d   : > { %s501_s7 = scalar_lea.vmem %s690_s22, 512  ;;  %p509_p2 = scmp.lt.s32.totalorder %s690_s22, %s690_s22 }
  0x1e   : > { %p502_p9 = scmp.ne.s32.totalorder %s690_s22, %s501_s7  ;;  %p510_p6 = scmp.lt.s32.totalorder %s501_s7, %s501_s7 }
  0x20   : > { %p504_p10 = pnand %p502_p9, %p490_p13  ;;  %p511_p4 = por %p510_p6, %p509_p2 }
  0x22   : > { %p505_p1 = pneg %p504_p10 }
  0x24   : > { %p512_p8 = pnand %p511_p4, %p505_p1 }
  0x26   : > { %515 = shalt.err (!%p512_p8)
}
  0x27   : > { %s619_s8 = smov 128   ;;  %s620_s9 = smov 8  }
  0x28   : > { %431 = dma.hbm_to_vmem [thread:$0]  (!%p697_p11), %s858_s1, 512, %s690_s22, [#allocation6], %s619_s8, %s619_s8, %s620_s9  }
  0x29   : > { %p25_p1 = scmp.eq.s32.totalorder %s24_s26, 0  ;;  %p34_p2 = scmp.ne.s32.totalorder %s612_s14, %s608_s13 }
  0x2a   : > { %p35_p4 = scmp.eq.s32.totalorder %s616_s15, 0  ;;  %p441_p6 = scmp.lt.s32.totalorder %s616_s15, 2 }
  0x2b   : > { %s736_s17 = scalar_select %p25_p1, %s612_s14, %s27_s25  }
  0x2c   : > { %p36_p8 = por %p35_p4, %p34_p2  ;;  %p868_p10 = scmp.eq.s32.totalorder %s667_s16, 1 }
  0x2d   : > { %s148_s23 = sand.u32 1, %s612_s14   ;;  %s417_s27 = sshll.u32 %s616_s15, 8 }
  0x2e   : > { %p740_p12 = por %p868_p10, %p34_p2  ;;  %s399_s28 = sshll.u32 %s148_s23, 4 }
  0x2f   : > { %s749_s4 = scalar_lea.hbm %s857_s0, %s417_s27  ;;  %s152_s22 = scalar_lea.vmem [#allocation2], %s399_s28 }
  0x30   : > { %s159_s25 = sshll.u32 %s152_s22, 4  ;;  %p751_p11 = pnand %p441_p6, %p36_p8  ;;  %s755_s25 = int_to_ptr.vmem [resolvable:$true] %s159_s25 }
  0x31   : > { %s757_s5 = scalar_lea.sflag [#allocation3], %s148_s23  ;;  %s516_s6 = scalar_lea.hbm %s749_s4, 256 }
  0x32   : > { %p517_p13 = scmp.ne.s32.totalorder %s749_s4, %s516_s6  ;;  %p518_p0 = pneg %p751_p11 }
  0x33   : > { %s521_s11 = scalar_lea.hbm %s857_s0, 512  ;;  %p522_p7 = scmp.lt.u32.totalorder %s749_s4, %s857_s0 }
  0x34   : > { %p519_p3 = pnand %p518_p0, %p517_p13  ;;  %p523_p9 = scmp.lt.u32.totalorder %s521_s11, %s516_s6 }
  0x35   : > { %p525_p2 = scmp.lt.u32.totalorder %s516_s6, %s749_s4 }
  0x36   : > { %p520_p5 = pneg %p519_p3  ;;  %p524_p1 = por %p523_p9, %p522_p7 }
  0x38   : > { %p526_p4 = por %p525_p2, %p524_p1 }
  0x3a   : > { %p527_p6 = pnand %p526_p4, %p520_p5 }
  0x3c   : > { %530 = shalt.err (!%p527_p6)
}
  0x3d   : > { %s531_s23 = scalar_lea.vmem %s755_s25, 256  ;;  %s621_s29 = smov [#allocation2]  }
  0x3e   : > { %p532_p8 = scmp.ne.s32.totalorder %s755_s25, %s531_s23  ;;  %s536_s30 = sshll.u32 %s621_s29, 4  ;;  %s537_s30 = int_to_ptr.vmem [resolvable:$false] %s536_s30 }
  0x3f   : > { %s538_s22 = scalar_lea.vmem %s537_s30, 512  ;;  %p539_p3 = scmp.lt.s32.totalorder %s755_s25, %s537_s30 }
  0x40   : > { %p534_p10 = pnand %p532_p8, %p518_p0  ;;  %p540_p7 = scmp.lt.s32.totalorder %s538_s22, %s531_s23 }
  0x42   : > { %p535_p13 = pneg %p534_p10  ;;  %p541_p9 = por %p540_p7, %p539_p3 }
  0x44   : > { %p542_p1 = pnand %p541_p9, %p535_p13 }
  0x46   : > { %545 = shalt.err (!%p542_p1)
}
  0x47   : > { %435 = dma.hbm_to_vmem [thread:$0]  (!%p751_p11), %s749_s4, 256, %s755_s25, %s757_s5, %s619_s8, %s619_s8, %s620_s9  }
  0x48   : > { %p871_p0 = scmp.ne.s32.totalorder %s866_s20, 0 }
  0x49   : > { %s791_s6 = sand.u32 (!%p871_p0), 1, %s608_s13   ;;  %p872_p5 = scmp.ne.s32.totalorder (!%p871_p0), %s864_s18, 0 }
  0x4a   : > { %171 = sbr.rel (%p871_p0) target bundleno = 326 (0x146), region = 32  ;;  %s403_s7 = sshll.u32 (!%p871_p0), %s791_s6, 4 }
  0x4b   : > { %s174_s10 = scalar_lea.sflag (!%p871_p0), [#allocation3], %s791_s6  ;;  %s177_s11 = scalar_lea.vmem (!%p871_p0), [#allocation2], %s403_s7 }
  0x51   : > { %591 = dma.done.wait (%p872_p5), %s174_s10, 256  }
  0x52   : > { %593 = vsyncadd (%p872_p5), %s174_s10, 4294967040  ;;  %p873_p2 = scmp.eq.s32.totalorder %s667_s16, 0 }
  0x54   : > { %595 = dma.done.wait (%p873_p2), [#allocation6], 512   ;;  %p874_p11 = pmov %p873_p2 }
  0x55   : > { %v622_v0 = vmov 0   ;;  %v482_v1 = vld [vmem:[#allocation5 + $0x4] ss:$8 sps:$4 sm:$0xff]   ;;  %v484_v2 = vld [vmem:[#allocation5] ss:$8 sps:$4 sm:$0xff]   ;;  %vm246_vm0 = vcmask 261120   ;;  %v216_v8 = vlaneseq }
  0x56   : > { %597 = vsyncadd (%p874_p11), [#allocation6], 4294966784  ;;  %282 = vmatprep.mubr.bf16.mxu0 %v622_v0  ;;  %250 = vmatprep.subr.bf16.mxu0 %v482_v1  ;;  %v485_v3 = vld [vmem:[#allocation5 + $0x14] ss:$8 sps:$4 sm:$0xff]   ;;  %v487_v4 = vld [vmem:[#allocation5 + $0x10] ss:$8 sps:$4 sm:$0xff]  }
  0x57   : > { %251 = vmatpush1.bf16.msra.mxu0 %v484_v2  ;;  %v207_v5 = vld [vmem:[%s177_s11] sm:$0xff]  ;;  %v208_v6 = vld [vmem:[%s177_s11 + $0x8] sm:$0xff]  ;;  %v217_v9 = vshrl.u32 %v216_v8, 7  ;;  %s405_s8 = sshll.u32 %s791_s6, 5  ;;  %s419_s25 = sshll.u32 %s667_s16, 9 }
  0x58   : > { %252 = vmatprep.subr.bf16.mxu0 %v485_v3  ;;  %v209_v7 = vpack.c.bf16 %v208_v6, %v207_v5  ;;  %v214_v11 = vld [vmem:[%s859_s2] sm:$0x3]  ;;  %s203_s9 = scalar_lea.vmem [#allocation7], %s405_s8  ;;  %s813_s27 = scalar_lea.hbm %s860_s3, %s419_s25 }
  0x59   : > { %v218_v10 = vsub.s32 0, %v217_v9  ;;  %v222_v12 = vsub.s32 1, %v217_v9  ;;  %s312_s4 = sshll.u32 %s203_s9, 4  ;;  %s298_s16 = scalar_lea.sflag [#allocation4], %s791_s6  ;;  %s808_s4 = int_to_ptr.vmem [resolvable:$true] %s312_s4 }
  0x5a   : > { %s546_s28 = scalar_lea.vmem %s808_s4, 512  ;;  %s623_s23 = smov [#allocation7]  }
  0x5b   : > { %253 = vmatpush1.bf16.msra.mxu0 %v487_v4  ;;  %v219_v13 = vrot.slane %v214_v11, %v218_v10  ;;  %v223_v14 = vrot.slane %v214_v11, %v222_v12  ;;  %p547_p4 = scmp.ne.s32.totalorder %s808_s4, %s546_s28  ;;  %s550_s29 = sshll.u32 %s623_s23, 4  ;;  %s551_s29 = int_to_ptr.vmem [resolvable:$false] %s550_s29 }
  0x5c   : > { %s552_s30 = scalar_lea.vmem %s551_s29, 1024  ;;  %p553_p10 = scmp.lt.s32.totalorder %s808_s4, %s551_s29 }
  0x5d   : > { %p548_p6 = pnand %p547_p4, %p740_p12  ;;  %p554_p13 = scmp.lt.s32.totalorder %s552_s30, %s546_s28 }
  0x5e   : > { %410 = vmatmul.mubr.msk.bf16.vlgmr.msra.gmra.mrb[0].mxu0 %vm246_vm0, %v209_v7 }
  0x5f   : > { %p549_p8 = pneg %p548_p6  ;;  %p555_p3 = por %p554_p13, %p553_p10 }
  0x61   : > { %p556_p7 = pnand %p555_p3, %p549_p8 }
 0x131   : > { %v284_v15 = vpop.f32.mrb[0].mxu0 }
 0x132   : > { %v285_v16 = vadd.f32 %v284_v15, %v219_v13  ;;  %v286_v17 = vpop.f32.mrb[1].mxu0 }
 0x133   : > { %v287_v18 = vadd.f32 %v286_v17, %v223_v14  ;;  %v288_v19 = vpop.f32.mrb[2].mxu0 }
 0x134   : > { %293 = vst [vmem:[%s203_s9] sm:$0xff] %v285_v16  ;;  %v289_v20 = vadd.f32 %v288_v19, %v219_v13  ;;  %v290_v21 = vpop.f32.mrb[3].mxu0 }
 0x135   : > { %294 = vst [vmem:[%s203_s9 + $0x8] sm:$0xff] %v287_v18  ;;  %v291_v22 = vadd.f32 %v290_v21, %v223_v14 }
 0x136   : > { %295 = vst [vmem:[%s203_s9 + $0x10] sm:$0xff] %v289_v20 }
 0x137   : > { %296 = vst [vmem:[%s203_s9 + $0x18] sm:$0xff] %v291_v22 }
 0x138   : > { %559 = shalt.err (!%p556_p7)
}
 0x139   : > { %s560_s22 = scalar_lea.hbm %s813_s27, 512  ;;  %s564_s11 = scalar_lea.hbm %s860_s3, 1024 }
 0x13a   : > { %p561_p9 = scmp.ne.s32.totalorder %s813_s27, %s560_s22  ;;  %p565_p5 = scmp.lt.u32.totalorder %s813_s27, %s860_s3 }
 0x13b   : > { %p566_p2 = scmp.lt.u32.totalorder %s564_s11, %s560_s22  ;;  %p568_p4 = scmp.lt.u32.totalorder %s560_s22, %s813_s27 }
 0x13c   : > { %p562_p1 = pnand %p561_p9, %p740_p12 }
 0x13d   : > { %p567_p11 = por %p566_p2, %p565_p5 }
 0x13e   : > { %p563_p0 = pneg %p562_p1 }
 0x13f   : > { %p569_p6 = por %p568_p4, %p567_p11 }
 0x141   : > { %p570_p8 = pnand %p569_p6, %p563_p0 }
 0x143   : > { %573 = shalt.err (!%p570_p8)
}
 0x144   : > { %s624_s8 = smov 256   ;;  %s625_s9 = smov 16  }
 0x145   : > { %426 = dma.vmem_to_hbm [thread:$0]  (%p740_p12), %s808_s4, 512, %s813_s27, %s298_s16, %s624_s8, %s624_s8, %s625_s9  }
 0x146 PF: > { %s327_s25 = sand.u32 1, %s604_s12   ;;  %p875_p10 = scmp.ne.s32.totalorder %s865_s19, 0 }
 0x147   : > { %p876_p13 = scmp.ge.s32.totalorder %s616_s15, 2  ;;  %s328_s26 = scalar_lea.sflag [#allocation4], %s327_s25 }
 0x149   : > { %p437_p3 = pnand %p876_p13, %p875_p10 }
 0x14b   : > { %599 = dma.done.wait (!%p437_p3), %s328_s26, 512  }
 0x14c   : > { %601 = vsyncadd (!%p437_p3), %s328_s26, 4294966784  ;;  %p17_p7 = scmp.ge.s32.totalorder %s702_s24, 4   ;;  %s877_s12 = smov %s608_s13 }
 0x14d   : > { %s878_s13 = smov %s612_s14  ;;  %s879_s14 = smov %s736_s17 }
 0x14e   : > { %s880_s15 = smov %s702_s24  ;;  %19 = sbr.rel (!%p17_p7) target bundleno = 6 (0x6), region = 81 }
 0x155   :  { %333 = vsyncpa [#allocation3], 1 }
 0x156   :  { %335 = vsyncpa [#allocation3 + $0x1], 1 }
 0x157   :  { %336 = vsyncpa [#allocation6], 1 }
 0x158   :  { %337 = vsyncpa [#allocation4], 1 }
 0x159   :  { %339 = vsyncpa [#allocation4 + $0x1], 1 }

</bundles_post_ra>
